<compile_context>
chip_gen: v6e
topology: v6e:2x2x1
jax: 0.10.0
libtpu: 0.0.40
codegen_flags: <defaults>
</compile_context>

<pallas_src>
import functools

import jax
import jax.numpy as jnp
from jax import lax
from jax.experimental import pallas as pl
from jax.experimental.pallas import tpu as pltpu

_LANE = 128


def _round_up(x, m):
    return (x + m - 1) // m * m


# ----------------------------------------------------------------------------
# Fused kernel: batched input-projection GEMM + register-resident LSTM
# recurrence (in-kernel time loop) + fc1 -> ReLU -> fc2 head.
# PyTorch gate order along the 4H axis: i | f | g | o (contiguous, unpadded).
# ----------------------------------------------------------------------------
def fused_lstm_kernel(x_ref, wih_ref, b_ref, whh_ref, w1_ref, b1_ref, w2_ref,
                      b2_ref, out_ref, xproj_scr):
    TB = x_ref.shape[0]
    B = out_ref.shape[0]
    T = TB // B
    H4 = whh_ref.shape[1]
    H = H4 // 4

    # (1) Input projection + bias for ALL timesteps as one GEMM, off the serial
    #     critical path, written to VMEM scratch (T*B, 4H).
    xproj_scr[...] = (jnp.dot(x_ref[...], wih_ref[...],
                              preferred_element_type=jnp.float32)
                      + b_ref[...])

    # Loop-invariant values hoisted (not re-emitted per unrolled step).
    whh = whh_ref[...]                                    # (H, 4H) in vregs
    lane = lax.broadcasted_iota(jnp.int32, (B, H4), 1)
    g_mask = (lane >= 2 * H) & (lane < 3 * H)             # tanh lanes (gate g)

    def step(t, carry):
        h, c = carry                                      # (B, H) register carry
        row = pl.multiple_of(t * B, 8)                    # sublane-aligned slice
        gates = xproj_scr[pl.ds(row, B), :] + jnp.dot(
            h, whh, preferred_element_type=jnp.float32)   # (B, 4H)
        # One sigmoid pass + one tanh pass over the packed gate vreg.
        act = jnp.where(g_mask, jnp.tanh(gates), jax.nn.sigmoid(gates))
        i_g = act[:, 0 * H:1 * H]
        f_g = act[:, 1 * H:2 * H]
        g_g = act[:, 2 * H:3 * H]
        o_g = act[:, 3 * H:4 * H]
        c_new = f_g * c + i_g * g_g
        h_new = o_g * jnp.tanh(c_new)
        return h_new, c_new

    h0 = jnp.zeros((B, H), jnp.float32)
    c0 = jnp.zeros((B, H), jnp.float32)
    h_last, _ = lax.fori_loop(0, T, step, (h0, c0), unroll=True)

    # fc1 -> ReLU -> fc2 head in the same kernel (lane-dense padded outputs).
    z = jnp.maximum(
        jnp.dot(h_last, w1_ref[...], preferred_element_type=jnp.float32)
        + b1_ref[...], 0.0)
    y = (jnp.dot(z, w2_ref[...], preferred_element_type=jnp.float32)
         + b2_ref[...])
    out_ref[...] = y.astype(out_ref.dtype)


def run_fused(x_flat, w_ih, b, w_hh, w1, b1, w2, b2, *, batch):
    """x_flat: (T*B, E) f32 embeddings -> padded logits (B, Op) f32."""
    TB, _ = x_flat.shape
    H4 = w_ih.shape[1]
    Op = w2.shape[1]
    return pl.pallas_call(
        fused_lstm_kernel,
        out_shape=jax.ShapeDtypeStruct((batch, Op), jnp.float32),
        grid=(1,),
        in_specs=[
            pl.BlockSpec(x_flat.shape, lambda i: (0, 0)),   # full (T*B, E) seq
            pl.BlockSpec(w_ih.shape, lambda i: (0, 0)),     # W_ih^T  (E, 4H)
            pl.BlockSpec(b.shape, lambda i: (0, 0)),        # b_ih + b_hh (1,4H)
            pl.BlockSpec(w_hh.shape, lambda i: (0, 0)),     # W_hh^T  (H, 4H)
            pl.BlockSpec(w1.shape, lambda i: (0, 0)),       # fc1^T padded
            pl.BlockSpec(b1.shape, lambda i: (0, 0)),       # fc1 bias padded
            pl.BlockSpec(w2.shape, lambda i: (0, 0)),       # fc2^T padded
            pl.BlockSpec(b2.shape, lambda i: (0, 0)),       # fc2 bias padded
        ],
        out_specs=pl.BlockSpec((batch, Op), lambda i: (0, 0)),
        scratch_shapes=[
            pltpu.VMEM((TB, H4), jnp.float32),              # xproj = X@Wih^T + b
        ],
        compiler_params=pltpu.CompilerParams(
            dimension_semantics=("arbitrary",)),
    )(x_flat, w_ih, b, w_hh, w1, b1, w2, b2)


# ----------------------------------------------------------------------------
# Parameter init (PyTorch layout) and one-time packing into kernel operands.
# ----------------------------------------------------------------------------
def init_params(key, vocab, emb, hidden, outputs):
    ks = jax.random.split(key, 9)
    s_lstm = 1.0 / jnp.sqrt(hidden)
    s_fc1 = 1.0 / jnp.sqrt(hidden)
    s_fc2 = 1.0 / jnp.sqrt(hidden // 2)
    return {
        "emb_table": jax.random.normal(ks[0], (vocab, emb), jnp.float32),
        # nn.LSTM: W_ih (4H, E), W_hh (4H, H), b_ih (4H,), b_hh (4H,)
        "w_ih": jax.random.uniform(ks[1], (4 * hidden, emb), jnp.float32, -s_lstm, s_lstm),
        "w_hh": jax.random.uniform(ks[2], (4 * hidden, hidden), jnp.float32, -s_lstm, s_lstm),
        "b_ih": jax.random.uniform(ks[3], (4 * hidden,), jnp.float32, -s_lstm, s_lstm),
        "b_hh": jax.random.uniform(ks[4], (4 * hidden,), jnp.float32, -s_lstm, s_lstm),
        "w_fc1": jax.random.uniform(ks[5], (hidden // 2, hidden), jnp.float32, -s_fc1, s_fc1),
        "b_fc1": jax.random.uniform(ks[6], (hidden // 2,), jnp.float32, -s_fc1, s_fc1),
        "w_fc2": jax.random.uniform(ks[7], (outputs, hidden // 2), jnp.float32, -s_fc2, s_fc2),
        "b_fc2": jax.random.uniform(ks[8], (outputs,), jnp.float32, -s_fc2, s_fc2),
    }


def pack_params(params, emb, hidden, outputs):
    """Pack PyTorch-layout params into kernel operands.

    LSTM weights stay UNPADDED (gates i|f|g|o packed contiguously along 4H);
    only the tiny fc head is zero-padded to 128 lanes so the final store is
    lane-dense.  All padding is inert (zero weights/bias => padded z / logit
    columns stay exactly 0) and the wrapper slices the real logits out.
    """
    H, Hh, O = hidden, hidden // 2, outputs
    Hhp, Op = _round_up(Hh, _LANE), _round_up(O, _LANE)

    w_ih_t = params["w_ih"].T.astype(jnp.float32)          # (E, 4H), cols i|f|g|o
    w_hh_t = params["w_hh"].T.astype(jnp.float32)          # (H, 4H)
    bias = (params["b_ih"] + params["b_hh"]).astype(jnp.float32).reshape(1, 4 * H)

    w1_p = jnp.zeros((H, Hhp), jnp.float32).at[:, :Hh].set(params["w_fc1"].T)
    b1_p = jnp.zeros((1, Hhp), jnp.float32).at[0, :Hh].set(params["b_fc1"])
    w2_p = jnp.zeros((Hhp, Op), jnp.float32).at[:Hh, :O].set(params["w_fc2"].T)
    b2_p = jnp.zeros((1, Op), jnp.float32).at[0, :O].set(params["b_fc2"])

    return {"emb_table": params["emb_table"].astype(jnp.float32),
            "w_ih": w_ih_t, "w_hh": w_hh_t, "b": bias,
            "w1": w1_p, "b1": b1_p, "w2": w2_p, "b2": b2_p}


@functools.partial(jax.jit, static_argnames=("outputs",))
def lstm_model_forward(packed, text, *, outputs):
    """text: (seq_len, batch) int32 token ids -> logits (batch, outputs) f32."""
    # TODO(synk): embedding gather stays in plain JAX (jnp.take); a scalar-prefetch
    # / DMA gather inside the kernel only pays off at realistic vocab/E/T.
    T, B = text.shape
    x = jnp.take(packed["emb_table"], text, axis=0)         # (T, B, E), unpadded
    x_flat = x.reshape(T * B, x.shape[-1])                  # (T*B, E)
    logits_pad = run_fused(x_flat, packed["w_ih"], packed["b"], packed["w_hh"],
                           packed["w1"], packed["b1"], packed["w2"], packed["b2"],
                           batch=B)
    return logits_pad[:, :outputs]


# ----------------------------------------------------------------------------
# Plain-JAX reference (matches the PyTorch module's forward).
# ----------------------------------------------------------------------------
def reference_forward(params, text):
    hp = functools.partial(jnp.dot, precision=jax.lax.Precision.HIGHEST)
    x = jnp.take(params["emb_table"], text, axis=0)          # (T, B, E)
    T, B, _ = x.shape
    H = params["w_hh"].shape[1]
    w_ih_t, w_hh_t = params["w_ih"].T, params["w_hh"].T
    b = params["b_ih"] + params["b_hh"]
    h = jnp.zeros((B, H), jnp.float32)
    c = jnp.zeros((B, H), jnp.float32)
    for t in range(T):
        gates = hp(x[t], w_ih_t) + hp(h, w_hh_t) + b
        i_g = jax.nn.sigmoid(gates[:, 0 * H:1 * H])
        f_g = jax.nn.sigmoid(gates[:, 1 * H:2 * H])
        g_g = jnp.tanh(gates[:, 2 * H:3 * H])
        o_g = jax.nn.sigmoid(gates[:, 3 * H:4 * H])
        c = f_g * c + i_g * g_g
        h = o_g * jnp.tanh(c)
    z = jnp.maximum(hp(h, params["w_fc1"].T) + params["b_fc1"], 0.0)
    return hp(z, params["w_fc2"].T) + params["b_fc2"]


if __name__ == "__main__":
    VOCAB, EMB, HIDDEN, OUTPUTS = 50, 32, 32, 4
    SEQ, BATCH = 8, 8          # BATCH kept a multiple of 8 (sublane-aligned slices)

    key = jax.random.PRNGKey(0)
    k_param, k_text = jax.random.split(key)
    params = init_params(k_param, VOCAB, EMB, HIDDEN, OUTPUTS)
    text = jax.random.randint(k_text, (SEQ, BATCH), 0, VOCAB, dtype=jnp.int32)

    packed = pack_params(params, EMB, HIDDEN, OUTPUTS)
    logits = lstm_model_forward(packed, text, outputs=OUTPUTS)
    jax.block_until_ready(logits)
    assert logits.shape == (BATCH, OUTPUTS) and logits.dtype == jnp.float32

    ref = reference_forward(params, text)
    max_diff = float(jnp.max(jnp.abs(logits - ref)))
    assert max_diff < 1e-3, "max abs diff = %e" % max_diff
    print("KERNEL_OK")
</pallas_src>

<mosaic_0001>
module attributes {stable_mosaic.version = 11 : i64} {
  func.func @fused_lstm_kernel(%arg0: i32, %arg1: memref<64x32xf32, #tpu.memory_space<vmem>>, %arg2: memref<32x128xf32, #tpu.memory_space<vmem>>, %arg3: memref<1x128xf32, #tpu.memory_space<vmem>>, %arg4: memref<32x128xf32, #tpu.memory_space<vmem>>, %arg5: memref<32x128xf32, #tpu.memory_space<vmem>>, %arg6: memref<1x128xf32, #tpu.memory_space<vmem>>, %arg7: memref<128x128xf32, #tpu.memory_space<vmem>>, %arg8: memref<1x128xf32, #tpu.memory_space<vmem>>, %arg9: memref<8x128xf32, #tpu.memory_space<vmem>>, %arg10: memref<64x128xf32, #tpu.memory_space<vmem>>) attributes {dimension_semantics = [#tpu.dimension_semantics<arbitrary>], iteration_bounds = array<i64: 1>, scalar_prefetch = 0 : i64, scratch_operands = 1 : i64, tpu.core_type = #tpu.core_type<tc>, window_params = [{pipeline_mode = #tpu.pipeline_mode<synchronous>, transform_indices = @transform_0, window_bounds = array<i64: 64, 32>}, {pipeline_mode = #tpu.pipeline_mode<synchronous>, transform_indices = @transform_1, window_bounds = array<i64: 32, 128>}, {pipeline_mode = #tpu.pipeline_mode<synchronous>, transform_indices = @transform_2, window_bounds = array<i64: 1, 128>}, {pipeline_mode = #tpu.pipeline_mode<synchronous>, transform_indices = @transform_3, window_bounds = array<i64: 32, 128>}, {pipeline_mode = #tpu.pipeline_mode<synchronous>, transform_indices = @transform_4, window_bounds = array<i64: 32, 128>}, {pipeline_mode = #tpu.pipeline_mode<synchronous>, transform_indices = @transform_5, window_bounds = array<i64: 1, 128>}, {pipeline_mode = #tpu.pipeline_mode<synchronous>, transform_indices = @transform_6, window_bounds = array<i64: 128, 128>}, {pipeline_mode = #tpu.pipeline_mode<synchronous>, transform_indices = @transform_7, window_bounds = array<i64: 1, 128>}, {pipeline_mode = #tpu.pipeline_mode<synchronous>, transform_indices = @transform_8, window_bounds = array<i64: 8, 128>}]} {
    %c0 = arith.constant 0 : index
    %c0_0 = arith.constant 0 : index
    %0 = vector.load %arg1[%c0, %c0_0] : memref<64x32xf32, #tpu.memory_space<vmem>>, vector<64x32xf32>
    %c0_1 = arith.constant 0 : index
    %c0_2 = arith.constant 0 : index
    %1 = vector.load %arg2[%c0_1, %c0_2] : memref<32x128xf32, #tpu.memory_space<vmem>>, vector<32x128xf32>
    %cst = arith.constant dense<0.000000e+00> : vector<64x128xf32>
    %2 = tpu.matmul %0, %1, %cst {dimension_numbers = #tpu.dot_dimension_numbers<[1], [0], [0], [1], [0, 0, 1, 1], [], []>} : vector<64x32xf32>, vector<32x128xf32>, vector<64x128xf32> -> vector<64x128xf32>
    %c0_3 = arith.constant 0 : index
    %c0_4 = arith.constant 0 : index
    %3 = vector.load %arg3[%c0_3, %c0_4] : memref<1x128xf32, #tpu.memory_space<vmem>>, vector<1x128xf32>
    %4 = vector.broadcast %3 : vector<1x128xf32> to vector<64x128xf32>
    %5 = arith.addf %2, %4 : vector<64x128xf32>
    %c0_5 = arith.constant 0 : index
    %c0_6 = arith.constant 0 : index
    %6 = vector.load %arg10[%c0_5, %c0_6] : memref<64x128xf32, #tpu.memory_space<vmem>>, vector<64x128xf32>
    tpu.vector_store %arg10[%c0_5, %c0_6], %5 {strides = array<i32>} : memref<64x128xf32, #tpu.memory_space<vmem>>, vector<64x128xf32>,
    %c0_7 = arith.constant 0 : index
    %c0_8 = arith.constant 0 : index
    %7 = vector.load %arg4[%c0_7, %c0_8] : memref<32x128xf32, #tpu.memory_space<vmem>>, vector<32x128xf32>
    %8 = tpu.iota {dimensions = array<i32: 1>} : vector<8x128xi32>
    %c64_i32 = arith.constant 64 : i32
    %9 = vector.broadcast %c64_i32 : i32 to vector<8x128xi32>
    %10 = arith.cmpi sge, %8, %9 : vector<8x128xi32>
    %c96_i32 = arith.constant 96 : i32
    %11 = vector.broadcast %c96_i32 : i32 to vector<8x128xi32>
    %12 = arith.cmpi slt, %8, %11 : vector<8x128xi32>
    %13 = arith.andi %10, %12 : vector<8x128xi1>
    %cst_9 = arith.constant 0.000000e+00 : f32
    %14 = vector.broadcast %cst_9 : f32 to vector<8x32xf32>
    %cst_10 = arith.constant 0.000000e+00 : f32
    %15 = vector.broadcast %cst_10 : f32 to vector<8x32xf32>
    %c0_i32 = arith.constant 0 : i32
    %c8_i32 = arith.constant 8 : i32
    %16 = arith.muli %c0_i32, %c8_i32 : i32
    %17 = tpu.assume_multiple %16, 8 : i32
    %18 = arith.index_cast %17 : i32 to index
    %c0_11 = arith.constant 0 : index
    %19 = vector.load %arg10[%18, %c0_11] : memref<64x128xf32, #tpu.memory_space<vmem>>, vector<8x128xf32>
    %cst_12 = arith.constant dense<0.000000e+00> : vector<8x128xf32>
    %20 = tpu.matmul %14, %7, %cst_12 {dimension_numbers = #tpu.dot_dimension_numbers<[1], [0], [0], [1], [0, 0, 1, 1], [], []>} : vector<8x32xf32>, vector<32x128xf32>, vector<8x128xf32> -> vector<8x128xf32>
    %21 = arith.addf %19, %20 : vector<8x128xf32>
    %22 = math.tanh %21 : vector<8x128xf32>
    %23 = arith.negf %21 : vector<8x128xf32>
    %24 = math.exp %23 : vector<8x128xf32>
    %cst_13 = arith.constant 1.000000e+00 : f32
    %25 = vector.broadcast %cst_13 : f32 to vector<8x128xf32>
    %26 = arith.addf %25, %24 : vector<8x128xf32>
    %27 = arith.divf %25, %26 : vector<8x128xf32>
    %28 = arith.select %13, %22, %27 : vector<8x128xi1>, vector<8x128xf32>
    %29 = vector.extract_strided_slice %28 {offsets = [0, 0], sizes = [8, 32], strides = [1, 1]} : vector<8x128xf32> to vector<8x32xf32>
    %30 = vector.extract_strided_slice %28 {offsets = [0, 32], sizes = [8, 32], strides = [1, 1]} : vector<8x128xf32> to vector<8x32xf32>
    %31 = vector.extract_strided_slice %28 {offsets = [0, 64], sizes = [8, 32], strides = [1, 1]} : vector<8x128xf32> to vector<8x32xf32>
    %32 = vector.extract_strided_slice %28 {offsets = [0, 96], sizes = [8, 32], strides = [1, 1]} : vector<8x128xf32> to vector<8x32xf32>
    %33 = arith.mulf %30, %15 : vector<8x32xf32>
    %34 = arith.mulf %29, %31 : vector<8x32xf32>
    %35 = arith.addf %33, %34 : vector<8x32xf32>
    %36 = math.tanh %35 : vector<8x32xf32>
    %37 = arith.mulf %32, %36 : vector<8x32xf32>
    %c1_i32 = arith.constant 1 : i32
    %c8_i32_14 = arith.constant 8 : i32
    %38 = arith.muli %c1_i32, %c8_i32_14 : i32
    %39 = tpu.assume_multiple %38, 8 : i32
    %40 = arith.index_cast %39 : i32 to index
    %c0_15 = arith.constant 0 : index
    %41 = vector.load %arg10[%40, %c0_15] : memref<64x128xf32, #tpu.memory_space<vmem>>, vector<8x128xf32>
    %cst_16 = arith.constant dense<0.000000e+00> : vector<8x128xf32>
    %42 = tpu.matmul %37, %7, %cst_16 {dimension_numbers = #tpu.dot_dimension_numbers<[1], [0], [0], [1], [0, 0, 1, 1], [], []>} : vector<8x32xf32>, vector<32x128xf32>, vector<8x128xf32> -> vector<8x128xf32>
    %43 = arith.addf %41, %42 : vector<8x128xf32>
    %44 = math.tanh %43 : vector<8x128xf32>
    %45 = arith.negf %43 : vector<8x128xf32>
    %46 = math.exp %45 : vector<8x128xf32>
    %cst_17 = arith.constant 1.000000e+00 : f32
    %47 = vector.broadcast %cst_17 : f32 to vector<8x128xf32>
    %48 = arith.addf %47, %46 : vector<8x128xf32>
    %49 = arith.divf %47, %48 : vector<8x128xf32>
    %50 = arith.select %13, %44, %49 : vector<8x128xi1>, vector<8x128xf32>
    %51 = vector.extract_strided_slice %50 {offsets = [0, 0], sizes = [8, 32], strides = [1, 1]} : vector<8x128xf32> to vector<8x32xf32>
    %52 = vector.extract_strided_slice %50 {offsets = [0, 32], sizes = [8, 32], strides = [1, 1]} : vector<8x128xf32> to vector<8x32xf32>
    %53 = vector.extract_strided_slice %50 {offsets = [0, 64], sizes = [8, 32], strides = [1, 1]} : vector<8x128xf32> to vector<8x32xf32>
    %54 = vector.extract_strided_slice %50 {offsets = [0, 96], sizes = [8, 32], strides = [1, 1]} : vector<8x128xf32> to vector<8x32xf32>
    %55 = arith.mulf %52, %35 : vector<8x32xf32>
    %56 = arith.mulf %51, %53 : vector<8x32xf32>
    %57 = arith.addf %55, %56 : vector<8x32xf32>
    %58 = math.tanh %57 : vector<8x32xf32>
    %59 = arith.mulf %54, %58 : vector<8x32xf32>
    %c2_i32 = arith.constant 2 : i32
    %c8_i32_18 = arith.constant 8 : i32
    %60 = arith.muli %c2_i32, %c8_i32_18 : i32
    %61 = tpu.assume_multiple %60, 8 : i32
    %62 = arith.index_cast %61 : i32 to index
    %c0_19 = arith.constant 0 : index
    %63 = vector.load %arg10[%62, %c0_19] : memref<64x128xf32, #tpu.memory_space<vmem>>, vector<8x128xf32>
    %cst_20 = arith.constant dense<0.000000e+00> : vector<8x128xf32>
    %64 = tpu.matmul %59, %7, %cst_20 {dimension_numbers = #tpu.dot_dimension_numbers<[1], [0], [0], [1], [0, 0, 1, 1], [], []>} : vector<8x32xf32>, vector<32x128xf32>, vector<8x128xf32> -> vector<8x128xf32>
    %65 = arith.addf %63, %64 : vector<8x128xf32>
    %66 = math.tanh %65 : vector<8x128xf32>
    %67 = arith.negf %65 : vector<8x128xf32>
    %68 = math.exp %67 : vector<8x128xf32>
    %cst_21 = arith.constant 1.000000e+00 : f32
    %69 = vector.broadcast %cst_21 : f32 to vector<8x128xf32>
    %70 = arith.addf %69, %68 : vector<8x128xf32>
    %71 = arith.divf %69, %70 : vector<8x128xf32>
    %72 = arith.select %13, %66, %71 : vector<8x128xi1>, vector<8x128xf32>
    %73 = vector.extract_strided_slice %72 {offsets = [0, 0], sizes = [8, 32], strides = [1, 1]} : vector<8x128xf32> to vector<8x32xf32>
    %74 = vector.extract_strided_slice %72 {offsets = [0, 32], sizes = [8, 32], strides = [1, 1]} : vector<8x128xf32> to vector<8x32xf32>
    %75 = vector.extract_strided_slice %72 {offsets = [0, 64], sizes = [8, 32], strides = [1, 1]} : vector<8x128xf32> to vector<8x32xf32>
    %76 = vector.extract_strided_slice %72 {offsets = [0, 96], sizes = [8, 32], strides = [1, 1]} : vector<8x128xf32> to vector<8x32xf32>
    %77 = arith.mulf %74, %57 : vector<8x32xf32>
    %78 = arith.mulf %73, %75 : vector<8x32xf32>
    %79 = arith.addf %77, %78 : vector<8x32xf32>
    %80 = math.tanh %79 : vector<8x32xf32>
    %81 = arith.mulf %76, %80 : vector<8x32xf32>
    %c3_i32 = arith.constant 3 : i32
    %c8_i32_22 = arith.constant 8 : i32
    %82 = arith.muli %c3_i32, %c8_i32_22 : i32
    %83 = tpu.assume_multiple %82, 8 : i32
    %84 = arith.index_cast %83 : i32 to index
    %c0_23 = arith.constant 0 : index
    %85 = vector.load %arg10[%84, %c0_23] : memref<64x128xf32, #tpu.memory_space<vmem>>, vector<8x128xf32>
    %cst_24 = arith.constant dense<0.000000e+00> : vector<8x128xf32>
    %86 = tpu.matmul %81, %7, %cst_24 {dimension_numbers = #tpu.dot_dimension_numbers<[1], [0], [0], [1], [0, 0, 1, 1], [], []>} : vector<8x32xf32>, vector<32x128xf32>, vector<8x128xf32> -> vector<8x128xf32>
    %87 = arith.addf %85, %86 : vector<8x128xf32>
    %88 = math.tanh %87 : vector<8x128xf32>
    %89 = arith.negf %87 : vector<8x128xf32>
    %90 = math.exp %89 : vector<8x128xf32>
    %cst_25 = arith.constant 1.000000e+00 : f32
    %91 = vector.broadcast %cst_25 : f32 to vector<8x128xf32>
    %92 = arith.addf %91, %90 : vector<8x128xf32>
    %93 = arith.divf %91, %92 : vector<8x128xf32>
    %94 = arith.select %13, %88, %93 : vector<8x128xi1>, vector<8x128xf32>
    %95 = vector.extract_strided_slice %94 {offsets = [0, 0], sizes = [8, 32], strides = [1, 1]} : vector<8x128xf32> to vector<8x32xf32>
    %96 = vector.extract_strided_slice %94 {offsets = [0, 32], sizes = [8, 32], strides = [1, 1]} : vector<8x128xf32> to vector<8x32xf32>
    %97 = vector.extract_strided_slice %94 {offsets = [0, 64], sizes = [8, 32], strides = [1, 1]} : vector<8x128xf32> to vector<8x32xf32>
    %98 = vector.extract_strided_slice %94 {offsets = [0, 96], sizes = [8, 32], strides = [1, 1]} : vector<8x128xf32> to vector<8x32xf32>
    %99 = arith.mulf %96, %79 : vector<8x32xf32>
    %100 = arith.mulf %95, %97 : vector<8x32xf32>
    %101 = arith.addf %99, %100 : vector<8x32xf32>
    %102 = math.tanh %101 : vector<8x32xf32>
    %103 = arith.mulf %98, %102 : vector<8x32xf32>
    %c4_i32 = arith.constant 4 : i32
    %c8_i32_26 = arith.constant 8 : i32
    %104 = arith.muli %c4_i32, %c8_i32_26 : i32
    %105 = tpu.assume_multiple %104, 8 : i32
    %106 = arith.index_cast %105 : i32 to index
    %c0_27 = arith.constant 0 : index
    %107 = vector.load %arg10[%106, %c0_27] : memref<64x128xf32, #tpu.memory_space<vmem>>, vector<8x128xf32>
    %cst_28 = arith.constant dense<0.000000e+00> : vector<8x128xf32>
    %108 = tpu.matmul %103, %7, %cst_28 {dimension_numbers = #tpu.dot_dimension_numbers<[1], [0], [0], [1], [0, 0, 1, 1], [], []>} : vector<8x32xf32>, vector<32x128xf32>, vector<8x128xf32> -> vector<8x128xf32>
    %109 = arith.addf %107, %108 : vector<8x128xf32>
    %110 = math.tanh %109 : vector<8x128xf32>
    %111 = arith.negf %109 : vector<8x128xf32>
    %112 = math.exp %111 : vector<8x128xf32>
    %cst_29 = arith.constant 1.000000e+00 : f32
    %113 = vector.broadcast %cst_29 : f32 to vector<8x128xf32>
    %114 = arith.addf %113, %112 : vector<8x128xf32>
    %115 = arith.divf %113, %114 : vector<8x128xf32>
    %116 = arith.select %13, %110, %115 : vector<8x128xi1>, vector<8x128xf32>
    %117 = vector.extract_strided_slice %116 {offsets = [0, 0], sizes = [8, 32], strides = [1, 1]} : vector<8x128xf32> to vector<8x32xf32>
    %118 = vector.extract_strided_slice %116 {offsets = [0, 32], sizes = [8, 32], strides = [1, 1]} : vector<8x128xf32> to vector<8x32xf32>
    %119 = vector.extract_strided_slice %116 {offsets = [0, 64], sizes = [8, 32], strides = [1, 1]} : vector<8x128xf32> to vector<8x32xf32>
    %120 = vector.extract_strided_slice %116 {offsets = [0, 96], sizes = [8, 32], strides = [1, 1]} : vector<8x128xf32> to vector<8x32xf32>
    %121 = arith.mulf %118, %101 : vector<8x32xf32>
    %122 = arith.mulf %117, %119 : vector<8x32xf32>
    %123 = arith.addf %121, %122 : vector<8x32xf32>
    %124 = math.tanh %123 : vector<8x32xf32>
    %125 = arith.mulf %120, %124 : vector<8x32xf32>
    %c5_i32 = arith.constant 5 : i32
    %c8_i32_30 = arith.constant 8 : i32
    %126 = arith.muli %c5_i32, %c8_i32_30 : i32
    %127 = tpu.assume_multiple %126, 8 : i32
    %128 = arith.index_cast %127 : i32 to index
    %c0_31 = arith.constant 0 : index
    %129 = vector.load %arg10[%128, %c0_31] : memref<64x128xf32, #tpu.memory_space<vmem>>, vector<8x128xf32>
    %cst_32 = arith.constant dense<0.000000e+00> : vector<8x128xf32>
    %130 = tpu.matmul %125, %7, %cst_32 {dimension_numbers = #tpu.dot_dimension_numbers<[1], [0], [0], [1], [0, 0, 1, 1], [], []>} : vector<8x32xf32>, vector<32x128xf32>, vector<8x128xf32> -> vector<8x128xf32>
    %131 = arith.addf %129, %130 : vector<8x128xf32>
    %132 = math.tanh %131 : vector<8x128xf32>
    %133 = arith.negf %131 : vector<8x128xf32>
    %134 = math.exp %133 : vector<8x128xf32>
    %cst_33 = arith.constant 1.000000e+00 : f32
    %135 = vector.broadcast %cst_33 : f32 to vector<8x128xf32>
    %136 = arith.addf %135, %134 : vector<8x128xf32>
    %137 = arith.divf %135, %136 : vector<8x128xf32>
    %138 = arith.select %13, %132, %137 : vector<8x128xi1>, vector<8x128xf32>
    %139 = vector.extract_strided_slice %138 {offsets = [0, 0], sizes = [8, 32], strides = [1, 1]} : vector<8x128xf32> to vector<8x32xf32>
    %140 = vector.extract_strided_slice %138 {offsets = [0, 32], sizes = [8, 32], strides = [1, 1]} : vector<8x128xf32> to vector<8x32xf32>
    %141 = vector.extract_strided_slice %138 {offsets = [0, 64], sizes = [8, 32], strides = [1, 1]} : vector<8x128xf32> to vector<8x32xf32>
    %142 = vector.extract_strided_slice %138 {offsets = [0, 96], sizes = [8, 32], strides = [1, 1]} : vector<8x128xf32> to vector<8x32xf32>
    %143 = arith.mulf %140, %123 : vector<8x32xf32>
    %144 = arith.mulf %139, %141 : vector<8x32xf32>
    %145 = arith.addf %143, %144 : vector<8x32xf32>
    %146 = math.tanh %145 : vector<8x32xf32>
    %147 = arith.mulf %142, %146 : vector<8x32xf32>
    %c6_i32 = arith.constant 6 : i32
    %c8_i32_34 = arith.constant 8 : i32
    %148 = arith.muli %c6_i32, %c8_i32_34 : i32
    %149 = tpu.assume_multiple %148, 8 : i32
    %150 = arith.index_cast %149 : i32 to index
    %c0_35 = arith.constant 0 : index
    %151 = vector.load %arg10[%150, %c0_35] : memref<64x128xf32, #tpu.memory_space<vmem>>, vector<8x128xf32>
    %cst_36 = arith.constant dense<0.000000e+00> : vector<8x128xf32>
    %152 = tpu.matmul %147, %7, %cst_36 {dimension_numbers = #tpu.dot_dimension_numbers<[1], [0], [0], [1], [0, 0, 1, 1], [], []>} : vector<8x32xf32>, vector<32x128xf32>, vector<8x128xf32> -> vector<8x128xf32>
    %153 = arith.addf %151, %152 : vector<8x128xf32>
    %154 = math.tanh %153 : vector<8x128xf32>
    %155 = arith.negf %153 : vector<8x128xf32>
    %156 = math.exp %155 : vector<8x128xf32>
    %cst_37 = arith.constant 1.000000e+00 : f32
    %157 = vector.broadcast %cst_37 : f32 to vector<8x128xf32>
    %158 = arith.addf %157, %156 : vector<8x128xf32>
    %159 = arith.divf %157, %158 : vector<8x128xf32>
    %160 = arith.select %13, %154, %159 : vector<8x128xi1>, vector<8x128xf32>
    %161 = vector.extract_strided_slice %160 {offsets = [0, 0], sizes = [8, 32], strides = [1, 1]} : vector<8x128xf32> to vector<8x32xf32>
    %162 = vector.extract_strided_slice %160 {offsets = [0, 32], sizes = [8, 32], strides = [1, 1]} : vector<8x128xf32> to vector<8x32xf32>
    %163 = vector.extract_strided_slice %160 {offsets = [0, 64], sizes = [8, 32], strides = [1, 1]} : vector<8x128xf32> to vector<8x32xf32>
    %164 = vector.extract_strided_slice %160 {offsets = [0, 96], sizes = [8, 32], strides = [1, 1]} : vector<8x128xf32> to vector<8x32xf32>
    %165 = arith.mulf %162, %145 : vector<8x32xf32>
    %166 = arith.mulf %161, %163 : vector<8x32xf32>
    %167 = arith.addf %165, %166 : vector<8x32xf32>
    %168 = math.tanh %167 : vector<8x32xf32>
    %169 = arith.mulf %164, %168 : vector<8x32xf32>
    %c7_i32 = arith.constant 7 : i32
    %c8_i32_38 = arith.constant 8 : i32
    %170 = arith.muli %c7_i32, %c8_i32_38 : i32
    %171 = tpu.assume_multiple %170, 8 : i32
    %172 = arith.index_cast %171 : i32 to index
    %c0_39 = arith.constant 0 : index
    %173 = vector.load %arg10[%172, %c0_39] : memref<64x128xf32, #tpu.memory_space<vmem>>, vector<8x128xf32>
    %cst_40 = arith.constant dense<0.000000e+00> : vector<8x128xf32>
    %174 = tpu.matmul %169, %7, %cst_40 {dimension_numbers = #tpu.dot_dimension_numbers<[1], [0], [0], [1], [0, 0, 1, 1], [], []>} : vector<8x32xf32>, vector<32x128xf32>, vector<8x128xf32> -> vector<8x128xf32>
    %175 = arith.addf %173, %174 : vector<8x128xf32>
    %176 = math.tanh %175 : vector<8x128xf32>
    %177 = arith.negf %175 : vector<8x128xf32>
    %178 = math.exp %177 : vector<8x128xf32>
    %cst_41 = arith.constant 1.000000e+00 : f32
    %179 = vector.broadcast %cst_41 : f32 to vector<8x128xf32>
    %180 = arith.addf %179, %178 : vector<8x128xf32>
    %181 = arith.divf %179, %180 : vector<8x128xf32>
    %182 = arith.select %13, %176, %181 : vector<8x128xi1>, vector<8x128xf32>
    %183 = vector.extract_strided_slice %182 {offsets = [0, 0], sizes = [8, 32], strides = [1, 1]} : vector<8x128xf32> to vector<8x32xf32>
    %184 = vector.extract_strided_slice %182 {offsets = [0, 32], sizes = [8, 32], strides = [1, 1]} : vector<8x128xf32> to vector<8x32xf32>
    %185 = vector.extract_strided_slice %182 {offsets = [0, 64], sizes = [8, 32], strides = [1, 1]} : vector<8x128xf32> to vector<8x32xf32>
    %186 = vector.extract_strided_slice %182 {offsets = [0, 96], sizes = [8, 32], strides = [1, 1]} : vector<8x128xf32> to vector<8x32xf32>
    %187 = arith.mulf %184, %167 : vector<8x32xf32>
    %188 = arith.mulf %183, %185 : vector<8x32xf32>
    %189 = arith.addf %187, %188 : vector<8x32xf32>
    %190 = math.tanh %189 : vector<8x32xf32>
    %191 = arith.mulf %186, %190 : vector<8x32xf32>
    %c8_i32_42 = arith.constant 8 : i32
    %c0_43 = arith.constant 0 : index
    %c0_44 = arith.constant 0 : index
    %192 = vector.load %arg5[%c0_43, %c0_44] : memref<32x128xf32, #tpu.memory_space<vmem>>, vector<32x128xf32>
    %cst_45 = arith.constant dense<0.000000e+00> : vector<8x128xf32>
    %193 = tpu.matmul %191, %192, %cst_45 {dimension_numbers = #tpu.dot_dimension_numbers<[1], [0], [0], [1], [0, 0, 1, 1], [], []>} : vector<8x32xf32>, vector<32x128xf32>, vector<8x128xf32> -> vector<8x128xf32>
    %c0_46 = arith.constant 0 : index
    %c0_47 = arith.constant 0 : index
    %194 = vector.load %arg6[%c0_46, %c0_47] : memref<1x128xf32, #tpu.memory_space<vmem>>, vector<1x128xf32>
    %195 = vector.broadcast %194 : vector<1x128xf32> to vector<8x128xf32>
    %196 = arith.addf %193, %195 : vector<8x128xf32>
    %cst_48 = arith.constant 0.000000e+00 : f32
    %197 = vector.broadcast %cst_48 : f32 to vector<8x128xf32>
    %198 = arith.maximumf %196, %197 : vector<8x128xf32>
    %c0_49 = arith.constant 0 : index
    %c0_50 = arith.constant 0 : index
    %199 = vector.load %arg7[%c0_49, %c0_50] : memref<128x128xf32, #tpu.memory_space<vmem>>, vector<128x128xf32>
    %cst_51 = arith.constant dense<0.000000e+00> : vector<8x128xf32>
    %200 = tpu.matmul %198, %199, %cst_51 {dimension_numbers = #tpu.dot_dimension_numbers<[1], [0], [0], [1], [0, 0, 1, 1], [], []>} : vector<8x128xf32>, vector<128x128xf32>, vector<8x128xf32> -> vector<8x128xf32>
    %c0_52 = arith.constant 0 : index
    %c0_53 = arith.constant 0 : index
    %201 = vector.load %arg8[%c0_52, %c0_53] : memref<1x128xf32, #tpu.memory_space<vmem>>, vector<1x128xf32>
    %202 = vector.broadcast %201 : vector<1x128xf32> to vector<8x128xf32>
    %203 = arith.addf %200, %202 : vector<8x128xf32>
    %c0_54 = arith.constant 0 : index
    %c0_55 = arith.constant 0 : index
    %204 = vector.load %arg9[%c0_54, %c0_55] : memref<8x128xf32, #tpu.memory_space<vmem>>, vector<8x128xf32>
    tpu.vector_store %arg9[%c0_54, %c0_55], %203 {strides = array<i32>} : memref<8x128xf32, #tpu.memory_space<vmem>>, vector<8x128xf32>,
    return
  }
  func.func @transform_0(%arg0: i32) -> (i32, i32) {
    %c0_i32 = arith.constant 0 : i32
    %c0_i32_0 = arith.constant 0 : i32
    %c0_i32_1 = arith.constant 0 : i32
    return %c0_i32, %c0_i32_0 : i32, i32
  }
  func.func @transform_1(%arg0: i32) -> (i32, i32) {
    %c0_i32 = arith.constant 0 : i32
    %c0_i32_0 = arith.constant 0 : i32
    %c0_i32_1 = arith.constant 0 : i32
    return %c0_i32, %c0_i32_0 : i32, i32
  }
  func.func @transform_2(%arg0: i32) -> (i32, i32) {
    %c0_i32 = arith.constant 0 : i32
    %c0_i32_0 = arith.constant 0 : i32
    %c0_i32_1 = arith.constant 0 : i32
    return %c0_i32, %c0_i32_0 : i32, i32
  }
  func.func @transform_3(%arg0: i32) -> (i32, i32) {
    %c0_i32 = arith.constant 0 : i32
    %c0_i32_0 = arith.constant 0 : i32
    %c0_i32_1 = arith.constant 0 : i32
    return %c0_i32, %c0_i32_0 : i32, i32
  }
  func.func @transform_4(%arg0: i32) -> (i32, i32) {
    %c0_i32 = arith.constant 0 : i32
    %c0_i32_0 = arith.constant 0 : i32
    %c0_i32_1 = arith.constant 0 : i32
    return %c0_i32, %c0_i32_0 : i32, i32
  }
  func.func @transform_5(%arg0: i32) -> (i32, i32) {
    %c0_i32 = arith.constant 0 : i32
    %c0_i32_0 = arith.constant 0 : i32
    %c0_i32_1 = arith.constant 0 : i32
    return %c0_i32, %c0_i32_0 : i32, i32
  }
  func.func @transform_6(%arg0: i32) -> (i32, i32) {
    %c0_i32 = arith.constant 0 : i32
    %c0_i32_0 = arith.constant 0 : i32
    %c0_i32_1 = arith.constant 0 : i32
    return %c0_i32, %c0_i32_0 : i32, i32
  }
  func.func @transform_7(%arg0: i32) -> (i32, i32) {
    %c0_i32 = arith.constant 0 : i32
    %c0_i32_0 = arith.constant 0 : i32
    %c0_i32_1 = arith.constant 0 : i32
    return %c0_i32, %c0_i32_0 : i32, i32
  }
  func.func @transform_8(%arg0: i32) -> (i32, i32) {
    %c0_i32 = arith.constant 0 : i32
    %c0_i32_0 = arith.constant 0 : i32
    %c0_i32_1 = arith.constant 0 : i32
    return %c0_i32, %c0_i32_0 : i32, i32
  }
}

</mosaic_0001>

<bundles_post_ra>
// kernel: lstm_model_forward.1
= control target key start
LH: loop header
LB: loop body
LE: loop exit
PB: predicated region body
PF: predicated region fallthrough
CT: control target
= control target key end

     0   :  { %vm48_vm0 = vcmask 261120   ;;  %v1524_v2 = vmov 0.0   ;;  %vm1525_vm1 = vmmov 0   ;;  %v190_v40 = vlaneseq  ;;  %s1527_s14 = smov 32   ;;  %s1892_s1 = inlined_call_operand.vmem [shape: f32[32,128], index: 1, kind: input, shape index: {}]   ;;  %s1893_s0 = inlined_call_operand.vmem [shape: f32[64,32], index: 0, kind: input, shape index: {}]   ;;  %s1894_s3 = inlined_call_operand.vmem [shape: f32[32,128], index: 3, kind: input, shape index: {}]   ;;  %s1895_s2 = inlined_call_operand.vmem [shape: f32[1,128], index: 2, kind: input, shape index: {}]   ;;  %s1896_s4 = inlined_call_operand.vmem [shape: f32[32,128], index: 4, kind: input, shape index: {}]   ;;  %s1897_s6 = inlined_call_operand.vmem [shape: f32[128,128], index: 6, kind: input, shape index: {}]   ;;  %s1898_s5 = inlined_call_operand.vmem [shape: f32[1,128], index: 5, kind: input, shape index: {}]   ;;  %s1899_s7 = inlined_call_operand.vmem [shape: f32[1,128], index: 7, kind: input, shape index: {}]   ;;  %s1900_s8 = inlined_call_operand.vmem [shape: f32[8,128], index: 8, kind: output, shape index: {}]  }
   0x1   :  { %v40_v0 = vld [vmem:[%s1892_s1 + $0x18] sm:$0xff]  ;;  %v39_v1 = vld [vmem:[%s1892_s1 + $0x10] sm:$0xff]  ;;  %1333 = vmatprep.subr.mxu1 %v1524_v2  ;;  %1341 = vmatprep.mubr.msk.f32.mxu1 %vm1525_vm1, %v1524_v2  ;;  %v29_v3 = vld [vmem:[%s1893_s0] sm:$0xff] }
   0x2   :  { %1302 = vmatprep.subr.mxu0 %v40_v0  ;;  %v38_v4 = vld [vmem:[%s1892_s1 + $0x8] sm:$0xff]  ;;  %1310 = vmatprep.mubr.msk.f32.mxu0 %vm48_vm0, %v29_v3  ;;  %v1592_v5 = vld [vmem:[%s1894_s3 + $0x18] sm:$0xff]  ;;  %v37_v6 = vld [vmem:[%s1892_s1] sm:$0xff]  ;;  %v191_v41 = vand.u32 127, %v190_v40 }
   0x3   :  { %1303 = vmatpush3.msra.mxu0 %v40_v0  ;;  %1334 = vmatpush3.msra.mxu1 %v1592_v5  ;;  %v1601_v7 = vld [vmem:[%s1894_s3 + $0x10] sm:$0xff]  ;;  %v30_v8 = vld [vmem:[%s1893_s0 + $0x8] sm:$0xff]  ;;  %v32_v11 = vld [vmem:[%s1893_s0 + $0x18] sm:$0xff] }
   0x4   :  { %1304 = vmatprep.subr.mxu0 %v39_v1  ;;  %1335 = vmatprep.subr.mxu1 %v1524_v2  ;;  %v1611_v9 = vld [vmem:[%s1894_s3 + $0x8] sm:$0xff]  ;;  %v31_v10 = vld [vmem:[%s1893_s0 + $0x10] sm:$0xff]  ;;  %v1629_v12 = vld [vmem:[%s1894_s3] sm:$0xff]  ;;  %vm192_vm2 = vcmp.ge.s32.totalorder %v191_v41, 64  ;;  %vm193_vm3 = vcmp.lt.s32.totalorder %v191_v41, 96 }
   0x5   :  { %1305 = vmatpush3.msra.mxu0 %v39_v1  ;;  %1336 = vmatpush3.msra.mxu1 %v1601_v7  ;;  %v33_v13 = vld [vmem:[%s1893_s0 + $0x20] sm:$0xff]  ;;  %v34_v14 = vld [vmem:[%s1893_s0 + $0x28] sm:$0xff]  ;;  %v35_v15 = vld [vmem:[%s1893_s0 + $0x30] sm:$0xff] }
   0x6   :  { %1306 = vmatprep.subr.mxu0 %v38_v4  ;;  %1337 = vmatprep.subr.mxu1 %v1524_v2  ;;  %v36_v16 = vld [vmem:[%s1893_s0 + $0x38] sm:$0xff]  ;;  %v1201_v17 = vld [vmem:[%s1895_s2] ss:$0 sm:$0xff]  ;;  %vm1685_vm4 = vmand %vm192_vm2, %vm193_vm3  ;;  %s1526_s2 = smov 64  }
   0x7   :  { %1307 = vmatpush3.msra.mxu0 %v38_v4  ;;  %1338 = vmatpush3.msra.mxu1 %v1611_v9  ;;  %v1017_v42 = vld [vmem:[%s1896_s4 + $0x8] sm:$0xff] }
   0x8   :  { %1308 = vmatprep.subr.mxu0 %v37_v6  ;;  %1339 = vmatprep.subr.mxu1 %v1524_v2 }
   0x9   :  { %1309 = vmatpush3.msra.mxu0 %v37_v6  ;;  %1340 = vmatpush3.msra.mxu1 %v1629_v12 }
   0xa   :  { %1311 = vmatmul.mubr.msk.f32.vlgmr.msra.gmra.mxu0 %vm48_vm0, %v30_v8  ;;  %1322 = vmatprep.subr.mxu0 %v1524_v2 }
   0xb   :  { %1323 = vmatpush3.msra.mxu0 %v1592_v5  ;;  %1313 = vmatprep.mubr.msk.f32.mxu0 %vm48_vm0, %v31_v10 }
   0xc   :  { %1324 = vmatprep.subr.mxu0 %v1524_v2  ;;  %1355 = vmatprep.subr.mxu1 %v1524_v2 }
   0xd   :  { %1325 = vmatpush3.msra.mxu0 %v1601_v7 }
   0xe   :  { %1314 = vmatmul.mubr.msk.f32.gmra.mxu0 %vm48_vm0, %v32_v11  ;;  %1326 = vmatprep.subr.mxu0 %v1524_v2 }
   0xf   :  { %1316 = vmatprep.mubr.msk.f32.mxu0 %vm48_vm0, %v33_v13  ;;  %1327 = vmatpush3.msra.mxu0 %v1611_v9 }
  0x10   :  { %1328 = vmatprep.subr.mxu0 %v1524_v2 }
  0x11   :  { %1329 = vmatpush3.msra.mxu0 %v1629_v12 }
  0x12   :  { %1317 = vmatmul.mubr.msk.f32.gmra.mxu0 %vm48_vm0, %v34_v14  ;;  %1344 = vmatprep.subr.mxu0 %v1524_v2 }
  0x13   :  { %1319 = vmatprep.mubr.msk.f32.mxu0 %vm48_vm0, %v35_v15 }
  0x16   :  { %1320 = vmatmul.mubr.msk.f32.gmra.mxu0 %vm48_vm0, %v36_v16 }
  0x17   :  { %1330 = vmatprep.mubr.msk.f32.mxu0 %vm1525_vm1, %v1524_v2 }
  0x1a   :  { %1331 = vmatmul.mubr.f32.vlgmr.msra.gmra.mxu0 %v1524_v2 }
  0x1b   :  { %1345 = vmatpush3.msra.mxu0 %v1592_v5  ;;  %1352 = vmatprep.mubr.msk.f32.mxu0 %vm1525_vm1, %v1524_v2 }
  0x1c   :  { %1346 = vmatprep.subr.mxu0 %v1524_v2 }
  0x1d   :  { %1347 = vmatpush3.msra.mxu0 %v1601_v7 }
  0x1e   :  { %1348 = vmatprep.subr.mxu0 %v1524_v2 }
  0x1f   :  { %1349 = vmatpush3.msra.mxu0 %v1611_v9 }
  0x20   :  { %1350 = vmatprep.subr.mxu0 %v1524_v2 }
  0x21   :  { %1351 = vmatpush3.msra.mxu0 %v1629_v12 }
  0x22   :  { %1366 = vmatprep.subr.mxu0 %v1524_v2 }
  0xca   :  { %v1312_v18 = vpop.f32.mrf.mxu0 }
  0xcb   :  { %v145_v19 = vadd.f32 %v1312_v18, %v1201_v17 }
  0xcc   :  { %v139_v20 = vpop.f32.mrf.mxu0 }
  0xcd   :  { %v140_v32 = vadd.f32 %v1201_v17, %v139_v20 }
  0xce   :  { %v1315_v21 = vpop.f32.mrf.mxu0 }
  0xcf   :  { %v1673_v22 = vadd.f32 %v1315_v21, %v1201_v17 }
  0xd0   :  { %v149_v23 = vpop.f32.mrf.mxu0 }
  0xd1   :  { %v1675_v24 = vadd.f32 %v1201_v17, %v149_v23 }
  0xd2   :  { %v1318_v25 = vpop.f32.mrf.mxu0 }
  0xd3   :  { %v1677_v26 = vadd.f32 %v1318_v25, %v1201_v17 }
  0xd4   :  { %v159_v27 = vpop.f32.mrf.mxu0 }
  0xd5   :  { %v1679_v28 = vadd.f32 %v1201_v17, %v159_v27 }
  0xd6   :  { %v1321_v29 = vpop.f32.mrf.mxu0 }
  0xd7   :  { %v1681_v30 = vadd.f32 %v1321_v29, %v1201_v17 }
  0xd8   :  { %v169_v31 = vpop.f32.mrf.mxu0 }
  0xd9   :  { %v1683_v33 = vadd.f32 %v1201_v17, %v169_v31 }
  0xda   :  { %v265_v34 = vpop.f32.mrf.mxu0 }
  0xdb   :  { %v269_v35 = vadd.f32 %v265_v34, %v140_v32 }
  0xdc   :  { %v1332_v36 = vpop.f32.mrf.mxu0 }
  0xdd   :  { %v1210_v37 = vmul.f32 -1.442695, %v269_v35 }
  0xdf   :  { %1460 = vpow2.f32 %v1210_v37 }
  0xe0   :  { %1462 = vtanh.f32 %v269_v35 }
  0xec   :  { %v1461_v38 = vpop.eup %1460 }
  0xed   :  { %v274_v39 = vadd.f32 1.0, %v1461_v38  ;;  %v1463_v43 = vpop.eup %1462 }
  0xef   :  { %1464 = vrcp.f32 %v274_v39 }
  0xfc   :  { %v1465_v44 = vpop.eup %1464 }
  0xfd   :  { %v277_v45 = vsel %vm1685_vm4, %v1463_v43, %v1465_v44 }
  0xfe   :  { %280 = vrot.lane.b32.xlu0 %v277_v45, %s1526_s2  ;;  %v278_v48 = vmul.f32 0.0, %v277_v45 }
 0x170   :  { %v281_v46 = vpop.permute.xlu0 %280 }
 0x171   :  { %v283_v47 = vmul.f32 %v281_v46, %v277_v45 }
 0x173   :  { %285 = vrot.lane.b32.xlu0 %v283_v47, %s1527_s14 }
 0x1e5   :  { %v286_v49 = vpop.permute.xlu0 %285 }
 0x1e6   :  { %v288_v50 = vadd.f32 %v286_v49, %v278_v48 }
 0x1e8   :  { %1466 = vtanh.f32 %v288_v50 }
 0x1f5   :  { %v1467_v51 = vpop.eup %1466 }
 0x1f6   :  { %291 = vrot.lane.b32.xlu1 %v1467_v51, %s1526_s2 }
 0x268   :  { %v292_v52 = vpop.permute.xlu1 %291 }
 0x269   :  { %v294_v53 = vmul.f32 %v292_v52, %v277_v45 }
 0x26b   :  { %298 = vrot.lane.b32.xlu1 %v294_v53, %s1527_s14 }
 0x2dd   :  { %v299_v54 = vpop.permute.xlu1 %298 }
 0x2de   :  { %1342 = vmatmul.mubr.msk.f32.vlgmr.msra.gmra.mxu1 %vm48_vm0, %v299_v54 }
 0x2df   :  { %1356 = vmatpush3.msra.mxu1 %v1592_v5  ;;  %1363 = vmatprep.mubr.msk.f32.mxu1 %vm1525_vm1, %v1524_v2 }
 0x2e0   :  { %1357 = vmatprep.subr.mxu1 %v1524_v2 }
 0x2e1   :  { %1358 = vmatpush3.msra.mxu1 %v1601_v7 }
 0x2e2   :  { %1359 = vmatprep.subr.mxu1 %v1524_v2 }
 0x2e3   :  { %1360 = vmatpush3.msra.mxu1 %v1611_v9 }
 0x2e4   :  { %1361 = vmatprep.subr.mxu1 %v1524_v2 }
 0x2e5   :  { %1362 = vmatpush3.msra.mxu1 %v1629_v12 }
 0x2e6   :  { %1377 = vmatprep.subr.mxu1 %v1524_v2 }
 0x39e   :  { %v368_v55 = vpop.f32.mrf.mxu1 }
 0x39f   :  { %v372_v56 = vadd.f32 %v368_v55, %v145_v19 }
 0x3a0   :  { %v1343_v57 = vpop.f32.mrf.mxu1 }
 0x3a1   :  { %v1212_v58 = vmul.f32 -1.442695, %v372_v56 }
 0x3a3   :  { %1468 = vpow2.f32 %v1212_v58 }
 0x3a4   :  { %1470 = vtanh.f32 %v372_v56 }
 0x3b0   :  { %v1469_v59 = vpop.eup %1468 }
 0x3b1   :  { %v377_v60 = vadd.f32 1.0, %v1469_v59  ;;  %v1471_v61 = vpop.eup %1470 }
 0x3b3   :  { %1472 = vrcp.f32 %v377_v60 }
 0x3c0   :  { %v1473_v62 = vpop.eup %1472 }
 0x3c1   :  { %v380_v63 = vsel %vm1685_vm4, %v1471_v61, %v1473_v62 }
 0x3c2   :  { %383 = vrot.lane.b32.xlu0 %v380_v63, %s1526_s2  ;;  %v381_v3 = vmul.f32 %v380_v63, %v288_v50 }
 0x434   :  { %v384_v0 = vpop.permute.xlu0 %383 }
 0x435   :  { %v386_v1 = vmul.f32 %v384_v0, %v380_v63 }
 0x437   :  { %388 = vrot.lane.b32.xlu1 %v386_v1, %s1527_s14 }
 0x4a9   :  { %v389_v4 = vpop.permute.xlu1 %388 }
 0x4aa   :  { %v391_v6 = vadd.f32 %v389_v4, %v381_v3 }
 0x4ac   :  { %1474 = vtanh.f32 %v391_v6 }
 0x4b9   :  { %v1475_v8 = vpop.eup %1474 }
 0x4ba   :  { %394 = vrot.lane.b32.xlu0 %v1475_v8, %s1526_s2 }
 0x52c   :  { %v395_v10 = vpop.permute.xlu0 %394 }
 0x52d   :  { %v397_v11 = vmul.f32 %v395_v10, %v380_v63 }
 0x52f   :  { %401 = vrot.lane.b32.xlu1 %v397_v11, %s1527_s14 }
 0x5a1   :  { %v402_v13 = vpop.permute.xlu1 %401 }
 0x5a2   :  { %1353 = vmatmul.mubr.msk.f32.vlgmr.msra.gmra.mxu0 %vm48_vm0, %v402_v13 }
 0x5a3   :  { %1367 = vmatpush3.msra.mxu0 %v1592_v5  ;;  %1374 = vmatprep.mubr.msk.f32.mxu0 %vm1525_vm1, %v1524_v2 }
 0x5a4   :  { %1368 = vmatprep.subr.mxu0 %v1524_v2 }
 0x5a5   :  { %1369 = vmatpush3.msra.mxu0 %v1601_v7 }
 0x5a6   :  { %1370 = vmatprep.subr.mxu0 %v1524_v2 }
 0x5a7   :  { %1371 = vmatpush3.msra.mxu0 %v1611_v9 }
 0x5a8   :  { %1372 = vmatprep.subr.mxu0 %v1524_v2 }
 0x5a9   :  { %1373 = vmatpush3.msra.mxu0 %v1629_v12 }
 0x5aa   :  { %1388 = vmatprep.subr.mxu0 %v1524_v2 }
 0x662   :  { %v471_v14 = vpop.f32.mrf.mxu0 }
 0x663   :  { %v475_v15 = vadd.f32 %v471_v14, %v1675_v24 }
 0x664   :  { %v1354_v16 = vpop.f32.mrf.mxu0 }
 0x665   :  { %v1214_v17 = vmul.f32 -1.442695, %v475_v15 }
 0x667   :  { %1476 = vpow2.f32 %v1214_v17 }
 0x668   :  { %1478 = vtanh.f32 %v475_v15 }
 0x674   :  { %v1477_v18 = vpop.eup %1476 }
 0x675   :  { %v480_v19 = vadd.f32 1.0, %v1477_v18  ;;  %v1479_v20 = vpop.eup %1478 }
 0x677   :  { %1480 = vrcp.f32 %v480_v19 }
 0x684   :  { %v1481_v21 = vpop.eup %1480 }
 0x685   :  { %v483_v23 = vsel %vm1685_vm4, %v1479_v20, %v1481_v21 }
 0x686   :  { %486 = vrot.lane.b32.xlu0 %v483_v23, %s1526_s2  ;;  %v484_v29 = vmul.f32 %v483_v23, %v391_v6 }
 0x6f8   :  { %v487_v25 = vpop.permute.xlu0 %486 }
 0x6f9   :  { %v489_v27 = vmul.f32 %v487_v25, %v483_v23 }
 0x6fb   :  { %491 = vrot.lane.b32.xlu1 %v489_v27, %s1527_s14 }
 0x76d   :  { %v492_v24 = vpop.permute.xlu1 %491 }
 0x76e   :  { %v494_v31 = vadd.f32 %v492_v24, %v484_v29 }
 0x770   :  { %1482 = vtanh.f32 %v494_v31 }
 0x77d   :  { %v1483_v32 = vpop.eup %1482 }
 0x77e   :  { %497 = vrot.lane.b32.xlu0 %v1483_v32, %s1526_s2 }
 0x7f0   :  { %v498_v34 = vpop.permute.xlu0 %497 }
 0x7f1   :  { %v500_v35 = vmul.f32 %v498_v34, %v483_v23 }
 0x7f3   :  { %504 = vrot.lane.b32.xlu1 %v500_v35, %s1527_s14 }
 0x865   :  { %v505_v36 = vpop.permute.xlu1 %504 }
 0x866   :  { %1364 = vmatmul.mubr.msk.f32.vlgmr.msra.gmra.mxu1 %vm48_vm0, %v505_v36 }
 0x867   :  { %1378 = vmatpush3.msra.mxu1 %v1592_v5  ;;  %1385 = vmatprep.mubr.msk.f32.mxu1 %vm1525_vm1, %v1524_v2 }
 0x868   :  { %1379 = vmatprep.subr.mxu1 %v1524_v2 }
 0x869   :  { %1380 = vmatpush3.msra.mxu1 %v1601_v7 }
 0x86a   :  { %1381 = vmatprep.subr.mxu1 %v1524_v2 }
 0x86b   :  { %1382 = vmatpush3.msra.mxu1 %v1611_v9 }
 0x86c   :  { %1383 = vmatprep.subr.mxu1 %v1524_v2 }
 0x86d   :  { %1384 = vmatpush3.msra.mxu1 %v1629_v12 }
 0x86e   :  { %1399 = vmatprep.subr.mxu1 %v1524_v2 }
 0x926   :  { %v574_v37 = vpop.f32.mrf.mxu1 }
 0x927   :  { %v578_v38 = vadd.f32 %v574_v37, %v1673_v22 }
 0x928   :  { %v1365_v39 = vpop.f32.mrf.mxu1 }
 0x929   :  { %v1216_v40 = vmul.f32 -1.442695, %v578_v38 }
 0x92b   :  { %1484 = vpow2.f32 %v1216_v40 }
 0x92c   :  { %1486 = vtanh.f32 %v578_v38 }
 0x938   :  { %v1485_v41 = vpop.eup %1484 }
 0x939   :  { %v583_v43 = vadd.f32 1.0, %v1485_v41  ;;  %v1487_v44 = vpop.eup %1486 }
 0x93b   :  { %1488 = vrcp.f32 %v583_v43 }
 0x948   :  { %v1489_v45 = vpop.eup %1488 }
 0x949   :  { %v586_v46 = vsel %vm1685_vm4, %v1487_v44, %v1489_v45 }
 0x94a   :  { %589 = vrot.lane.b32.xlu0 %v586_v46, %s1526_s2  ;;  %v587_v49 = vmul.f32 %v586_v46, %v494_v31 }
 0x9bc   :  { %v590_v47 = vpop.permute.xlu0 %589 }
 0x9bd   :  { %v592_v48 = vmul.f32 %v590_v47, %v586_v46 }
 0x9bf   :  { %594 = vrot.lane.b32.xlu1 %v592_v48, %s1527_s14 }
 0xa31   :  { %v595_v22 = vpop.permute.xlu1 %594 }
 0xa32   :  { %v597_v50 = vadd.f32 %v595_v22, %v587_v49 }
 0xa34   :  { %1490 = vtanh.f32 %v597_v50 }
 0xa41   :  { %v1491_v51 = vpop.eup %1490 }
 0xa42   :  { %600 = vrot.lane.b32.xlu0 %v1491_v51, %s1526_s2 }
 0xab4   :  { %v601_v52 = vpop.permute.xlu0 %600 }
 0xab5   :  { %v603_v53 = vmul.f32 %v601_v52, %v586_v46 }
 0xab7   :  { %607 = vrot.lane.b32.xlu1 %v603_v53, %s1527_s14 }
 0xb29   :  { %v608_v54 = vpop.permute.xlu1 %607 }
 0xb2a   :  { %1375 = vmatmul.mubr.msk.f32.vlgmr.msra.gmra.mxu0 %vm48_vm0, %v608_v54 }
 0xb2b   :  { %1389 = vmatpush3.msra.mxu0 %v1592_v5  ;;  %1396 = vmatprep.mubr.msk.f32.mxu0 %vm1525_vm1, %v1524_v2 }
 0xb2c   :  { %1390 = vmatprep.subr.mxu0 %v1524_v2 }
 0xb2d   :  { %1391 = vmatpush3.msra.mxu0 %v1601_v7 }
 0xb2e   :  { %1392 = vmatprep.subr.mxu0 %v1524_v2 }
 0xb2f   :  { %1393 = vmatpush3.msra.mxu0 %v1611_v9 }
 0xb30   :  { %1394 = vmatprep.subr.mxu0 %v1524_v2 }
 0xb31   :  { %1395 = vmatpush3.msra.mxu0 %v1629_v12 }
 0xb32   :  { %1410 = vmatprep.subr.mxu0 %v1524_v2 }
 0xbea   :  { %v677_v55 = vpop.f32.mrf.mxu0 }
 0xbeb   :  { %v681_v56 = vadd.f32 %v677_v55, %v1679_v28 }
 0xbec   :  { %v1376_v57 = vpop.f32.mrf.mxu0 }
 0xbed   :  { %v1218_v58 = vmul.f32 -1.442695, %v681_v56 }
 0xbef   :  { %1492 = vpow2.f32 %v1218_v58 }
 0xbf0   :  { %1494 = vtanh.f32 %v681_v56 }
 0xbfc   :  { %v1493_v59 = vpop.eup %1492 }
 0xbfd   :  { %v686_v60 = vadd.f32 1.0, %v1493_v59  ;;  %v1495_v61 = vpop.eup %1494 }
 0xbff   :  { %1496 = vrcp.f32 %v686_v60 }
 0xc0c   :  { %v1497_v62 = vpop.eup %1496 }
 0xc0d   :  { %v689_v63 = vsel %vm1685_vm4, %v1495_v61, %v1497_v62  ;;  %v1019_v61 = vld [vmem:[%s1896_s4 + $0x18] sm:$0xff]  ;;  %v1018_v62 = vld [vmem:[%s1896_s4 + $0x10] sm:$0xff] }
 0xc0e   :  { %692 = vrot.lane.b32.xlu0 %v689_v63, %s1526_s2  ;;  %v690_v3 = vmul.f32 %v689_v63, %v597_v50 }
 0xc80   :  { %v693_v0 = vpop.permute.xlu0 %692 }
 0xc81   :  { %v695_v1 = vmul.f32 %v693_v0, %v689_v63 }
 0xc83   :  { %697 = vrot.lane.b32.xlu1 %v695_v1, %s1527_s14  ;;  %v1118_v1 = vld [vmem:[%s1897_s6 + $0x78] sm:$0xff] }
 0xcf5   :  { %v698_v28 = vpop.permute.xlu1 %697 }
 0xcf6   :  { %v700_v4 = vadd.f32 %v698_v28, %v690_v3  ;;  %v1117_v3 = vld [vmem:[%s1897_s6 + $0x70] sm:$0xff]  ;;  %v1116_v28 = vld [vmem:[%s1897_s6 + $0x68] sm:$0xff] }
 0xcf8   :  { %1498 = vtanh.f32 %v700_v4 }
 0xd05   :  { %v1499_v6 = vpop.eup %1498 }
 0xd06   :  { %703 = vrot.lane.b32.xlu0 %v1499_v6, %s1526_s2  ;;  %v1114_v6 = vld [vmem:[%s1897_s6 + $0x58] sm:$0xff] }
 0xd78   :  { %v704_v8 = vpop.permute.xlu0 %703 }
 0xd79   :  { %v706_v10 = vmul.f32 %v704_v8, %v689_v63  ;;  %v1016_v63 = vld [vmem:[%s1896_s4] sm:$0xff]  ;;  %v1113_v8 = vld [vmem:[%s1897_s6 + $0x50] sm:$0xff] }
 0xd7b   :  { %710 = vrot.lane.b32.xlu1 %v706_v10, %s1527_s14 }
 0xded   :  { %v711_v11 = vpop.permute.xlu1 %710 }
 0xdee   :  { %1386 = vmatmul.mubr.msk.f32.vlgmr.msra.gmra.mxu1 %vm48_vm0, %v711_v11 }
 0xdef   :  { %1400 = vmatpush3.msra.mxu1 %v1592_v5  ;;  %1407 = vmatprep.mubr.msk.f32.mxu1 %vm1525_vm1, %v1524_v2 }
 0xdf0   :  { %1401 = vmatprep.subr.mxu1 %v1524_v2 }
 0xdf1   :  { %1402 = vmatpush3.msra.mxu1 %v1601_v7 }
 0xdf2   :  { %1403 = vmatprep.subr.mxu1 %v1524_v2 }
 0xdf3   :  { %1404 = vmatpush3.msra.mxu1 %v1611_v9 }
 0xdf4   :  { %1405 = vmatprep.subr.mxu1 %v1524_v2 }
 0xdf5   :  { %1406 = vmatpush3.msra.mxu1 %v1629_v12 }
 0xdf6   :  { %1421 = vmatprep.subr.mxu1 %v1524_v2 }
 0xeae   :  { %v780_v13 = vpop.f32.mrf.mxu1 }
 0xeaf   :  { %v784_v5 = vadd.f32 %v780_v13, %v1677_v26  ;;  %v1112_v13 = vld [vmem:[%s1897_s6 + $0x48] sm:$0xff] }
 0xeb0   :  { %v1387_v14 = vpop.f32.mrf.mxu1 }
 0xeb1   :  { %v1220_v15 = vmul.f32 -1.442695, %v784_v5  ;;  %v1110_v14 = vld [vmem:[%s1897_s6 + $0x38] sm:$0xff] }
 0xeb3   :  { %1500 = vpow2.f32 %v1220_v15  ;;  %v1109_v15 = vld [vmem:[%s1897_s6 + $0x30] sm:$0xff] }
 0xeb4   :  { %1502 = vtanh.f32 %v784_v5  ;;  %v1111_v5 = vld [vmem:[%s1897_s6 + $0x40] sm:$0xff] }
 0xec0   :  { %v1501_v16 = vpop.eup %1500 }
 0xec1   :  { %v789_v17 = vadd.f32 1.0, %v1501_v16  ;;  %v1503_v7 = vpop.eup %1502  ;;  %v1108_v16 = vld [vmem:[%s1897_s6 + $0x28] sm:$0xff] }
 0xec3   :  { %1504 = vrcp.f32 %v789_v17  ;;  %v1107_v17 = vld [vmem:[%s1897_s6 + $0x20] sm:$0xff] }
 0xed0   :  { %v1505_v18 = vpop.eup %1504 }
 0xed1   :  { %v792_v9 = vsel %vm1685_vm4, %v1503_v7, %v1505_v18  ;;  %v1106_v7 = vld [vmem:[%s1897_s6 + $0x18] sm:$0xff] }
 0xed2   :  { %795 = vrot.lane.b32.xlu0 %v792_v9, %s1526_s2  ;;  %v793_v20 = vmul.f32 %v792_v9, %v700_v4  ;;  %v1115_v4 = vld [vmem:[%s1897_s6 + $0x60] sm:$0xff] }
 0xf44   :  { %v796_v12 = vpop.permute.xlu0 %795 }
 0xf45   :  { %v798_v19 = vmul.f32 %v796_v12, %v792_v9  ;;  %v1104_v12 = vld [vmem:[%s1897_s6 + $0x8] sm:$0xff] }
 0xf47   :  { %800 = vrot.lane.b32.xlu1 %v798_v19, %s1527_s14  ;;  %v1103_v19 = vld [vmem:[%s1897_s6] sm:$0xff] }
 0xfb9   :  { %v801_v26 = vpop.permute.xlu1 %800 }
 0xfba   :  { %v803_v21 = vadd.f32 %v801_v26, %v793_v20  ;;  %v1225_v20 = vld [vmem:[%s1898_s5] ss:$0 sm:$0xff] }
 0xfbc   :  { %1506 = vtanh.f32 %v803_v21 }
 0xfc9   :  { %v1507_v23 = vpop.eup %1506 }
 0xfca   :  { %806 = vrot.lane.b32.xlu0 %v1507_v23, %s1526_s2 }
0x103c   :  { %v807_v25 = vpop.permute.xlu0 %806 }
0x103d   :  { %v809_v27 = vmul.f32 %v807_v25, %v792_v9  ;;  %v1105_v9 = vld [vmem:[%s1897_s6 + $0x10] sm:$0xff] }
0x103f   :  { %813 = vrot.lane.b32.xlu1 %v809_v27, %s1527_s14  ;;  %v1227_v27 = vld [vmem:[%s1899_s7] ss:$0 sm:$0xff] }
0x10b1   :  { %v814_v29 = vpop.permute.xlu1 %813 }
0x10b2   :  { %1397 = vmatmul.mubr.msk.f32.vlgmr.msra.gmra.mxu0 %vm48_vm0, %v814_v29 }
0x10b3   :  { %1418 = vmatprep.mubr.msk.f32.mxu0 %vm1525_vm1, %v1524_v2  ;;  %1411 = vmatpush3.msra.mxu0 %v1019_v61 }
0x10b4   :  { %1412 = vmatprep.subr.mxu0 %v1524_v2 }
0x10b5   :  { %1413 = vmatpush3.msra.mxu0 %v1018_v62 }
0x10b6   :  { %1414 = vmatprep.subr.mxu0 %v1524_v2 }
0x10b7   :  { %1415 = vmatpush3.msra.mxu0 %v1017_v42 }
0x10b8   :  { %1416 = vmatprep.subr.mxu0 %v1524_v2 }
0x10b9   :  { %1417 = vmatpush3.msra.mxu0 %v1016_v63 }
0x1172   :  { %v883_v24 = vpop.f32.mrf.mxu0 }
0x1173   :  { %v887_v31 = vadd.f32 %v883_v24, %v1683_v33 }
0x1174   :  { %v1398_v32 = vpop.f32.mrf.mxu0 }
0x1175   :  { %v1222_v34 = vmul.f32 -1.442695, %v887_v31 }
0x1177   :  { %1508 = vpow2.f32 %v1222_v34 }
0x1178   :  { %1510 = vtanh.f32 %v887_v31 }
0x1184   :  { %v1509_v35 = vpop.eup %1508 }
0x1185   :  { %v892_v36 = vadd.f32 1.0, %v1509_v35  ;;  %v1511_v37 = vpop.eup %1510 }
0x1187   :  { %1512 = vrcp.f32 %v892_v36 }
0x1194   :  { %v1513_v38 = vpop.eup %1512 }
0x1195   :  { %v895_v39 = vsel %vm1685_vm4, %v1511_v37, %v1513_v38 }
0x1196   :  { %898 = vrot.lane.b32.xlu0 %v895_v39, %s1526_s2  ;;  %v896_v43 = vmul.f32 %v895_v39, %v803_v21 }
0x1208   :  { %v899_v40 = vpop.permute.xlu0 %898 }
0x1209   :  { %v901_v41 = vmul.f32 %v899_v40, %v895_v39 }
0x120b   :  { %903 = vrot.lane.b32.xlu1 %v901_v41, %s1527_s14 }
0x127d   :  { %v904_v33 = vpop.permute.xlu1 %903 }
0x127e   :  { %v906_v44 = vadd.f32 %v904_v33, %v896_v43 }
0x1280   :  { %1514 = vtanh.f32 %v906_v44 }
0x128d   :  { %v1515_v45 = vpop.eup %1514 }
0x128e   :  { %909 = vrot.lane.b32.xlu0 %v1515_v45, %s1526_s2 }
0x1300   :  { %v910_v46 = vpop.permute.xlu0 %909 }
0x1301   :  { %v912_v47 = vmul.f32 %v910_v46, %v895_v39 }
0x1303   :  { %916 = vrot.lane.b32.xlu1 %v912_v47, %s1527_s14 }
0x1375   :  { %v917_v48 = vpop.permute.xlu1 %916 }
0x1376   :  { %1408 = vmatmul.mubr.msk.f32.vlgmr.msra.gmra.mxu1 %vm48_vm0, %v917_v48 }
0x1377   :  { %1453 = vmatprep.mubr.msk.f32.mxu1 %vm1525_vm1, %v1524_v2  ;;  %1422 = vmatpush3.msra.mxu1 %v1118_v1 }
0x1378   :  { %1423 = vmatprep.subr.mxu1 %v1524_v2 }
0x1379   :  { %1424 = vmatpush3.msra.mxu1 %v1117_v3 }
0x137a   :  { %1425 = vmatprep.subr.mxu1 %v1524_v2 }
0x137b   :  { %1426 = vmatpush3.msra.mxu1 %v1116_v28 }
0x137c   :  { %1427 = vmatprep.subr.mxu1 %v1524_v2 }
0x137d   :  { %1428 = vmatpush3.msra.mxu1 %v1115_v4 }
0x137e   :  { %1429 = vmatprep.subr.mxu1 %v1524_v2 }
0x137f   :  { %1430 = vmatpush3.msra.mxu1 %v1114_v6 }
0x1380   :  { %1431 = vmatprep.subr.mxu1 %v1524_v2 }
0x1381   :  { %1432 = vmatpush3.msra.mxu1 %v1113_v8 }
0x1382   :  { %1433 = vmatprep.subr.mxu1 %v1524_v2 }
0x1383   :  { %1434 = vmatpush3.msra.mxu1 %v1112_v13 }
0x1384   :  { %1435 = vmatprep.subr.mxu1 %v1524_v2 }
0x1385   :  { %1436 = vmatpush3.msra.mxu1 %v1111_v5 }
0x1386   :  { %1437 = vmatprep.subr.mxu1 %v1524_v2 }
0x1387   :  { %1438 = vmatpush3.msra.mxu1 %v1110_v14 }
0x1388   :  { %1439 = vmatprep.subr.mxu1 %v1524_v2 }
0x1389   :  { %1440 = vmatpush3.msra.mxu1 %v1109_v15 }
0x138a   :  { %1441 = vmatprep.subr.mxu1 %v1524_v2 }
0x138b   :  { %1442 = vmatpush3.msra.mxu1 %v1108_v16 }
0x138c   :  { %1443 = vmatprep.subr.mxu1 %v1524_v2 }
0x138d   :  { %1444 = vmatpush3.msra.mxu1 %v1107_v17 }
0x138e   :  { %1445 = vmatprep.subr.mxu1 %v1524_v2 }
0x138f   :  { %1446 = vmatpush3.msra.mxu1 %v1106_v7 }
0x1390   :  { %1447 = vmatprep.subr.mxu1 %v1524_v2 }
0x1391   :  { %1448 = vmatpush3.msra.mxu1 %v1105_v9 }
0x1392   :  { %1449 = vmatprep.subr.mxu1 %v1524_v2 }
0x1393   :  { %1450 = vmatpush3.msra.mxu1 %v1104_v12 }
0x1394   :  { %1451 = vmatprep.subr.mxu1 %v1524_v2 }
0x1395   :  { %1452 = vmatpush3.msra.mxu1 %v1103_v19 }
0x1436   :  { %v986_v49 = vpop.f32.mrf.mxu1 }
0x1437   :  { %v990_v22 = vadd.f32 %v986_v49, %v1681_v30 }
0x1438   :  { %v1409_v50 = vpop.f32.mrf.mxu1 }
0x1439   :  { %v1224_v51 = vmul.f32 -1.442695, %v990_v22 }
0x143b   :  { %1516 = vpow2.f32 %v1224_v51 }
0x143c   :  { %1518 = vtanh.f32 %v990_v22 }
0x1448   :  { %v1517_v52 = vpop.eup %1516 }
0x1449   :  { %v995_v53 = vadd.f32 1.0, %v1517_v52  ;;  %v1519_v54 = vpop.eup %1518 }
0x144b   :  { %1520 = vrcp.f32 %v995_v53 }
0x1458   :  { %v1521_v55 = vpop.eup %1520 }
0x1459   :  { %v998_v56 = vsel %vm1685_vm4, %v1519_v54, %v1521_v55 }
0x145a   :  { %1001 = vrot.lane.b32.xlu0 %v998_v56, %s1526_s2  ;;  %v999_v59 = vmul.f32 %v998_v56, %v906_v44 }
0x14cc   :  { %v1002_v57 = vpop.permute.xlu0 %1001 }
0x14cd   :  { %v1004_v58 = vmul.f32 %v1002_v57, %v998_v56 }
0x14cf   :  { %1006 = vrot.lane.b32.xlu1 %v1004_v58, %s1527_s14 }
0x1541   :  { %v1007_v30 = vpop.permute.xlu1 %1006 }
0x1542   :  { %v1009_v60 = vadd.f32 %v1007_v30, %v999_v59 }
0x1544   :  { %1522 = vtanh.f32 %v1009_v60 }
0x1551   :  { %v1523_v0 = vpop.eup %1522 }
0x1552   :  { %1012 = vrot.lane.b32.xlu0 %v1523_v0, %s1526_s2 }
0x15c4   :  { %v1013_v10 = vpop.permute.xlu0 %1012 }
0x15c5   :  { %v1015_v11 = vmul.f32 %v1013_v10, %v998_v56 }
0x15c7   :  { %1028 = vrot.lane.b32.xlu1 %v1015_v11, %s1527_s14 }
0x1639   :  { %v1029_v18 = vpop.permute.xlu1 %1028 }
0x163a   :  { %1419 = vmatmul.mubr.msk.f32.vlgmr.msra.gmra.mxu0 %vm48_vm0, %v1029_v18 }
0x16fa   :  { %v1098_v26 = vpop.f32.mrf.mxu0 }
0x16fb   :  { %v1099_v21 = vadd.f32 %v1225_v20, %v1098_v26 }
0x16fc   :  { %v1420_v23 = vpop.f32.mrf.mxu0 }
0x16fd   :  { %v1102_v25 = vmax.f32 %v1099_v21, 0.0 }
0x16ff   :  { %1454 = vmatmul.mubr.f32.vlgmr.msra.gmra.mxu1 %v1102_v25 }
0x17bf   :  { %v1192_v29 = vpop.f32.mrf.mxu1 }
0x17c0   :  { %v1193_v2 = vadd.f32 %v1227_v27, %v1192_v29 }
0x17c1   :  { %v1455_v24 = vpop.f32.mrf.mxu1 }
0x17c2   :  { %1196 = vst [vmem:[%s1900_s8] sm:$0xff] %v1193_v2 }

</bundles_post_ra>
